<compile_context>
chip_gen: v7x
topology: tpu7x:2x2x1
jax: 0.10.0
libtpu: 0.0.40
codegen_flags: <defaults>
</compile_context>

<pallas_src>
import functools

import jax
import jax.numpy as jnp
from jax.experimental import pallas as pl
from jax.experimental.pallas import tpu as pltpu

LANE = 128


def _mlp_kernel(x_ref,
                w1_ref, b1_ref,
                w2_ref, b2_ref,
                w3_ref, b3_ref,
                w4_ref, b4_ref,
                w5_ref, b5_ref,
                o_ref):
    """Fused 5-layer MLP on one row-tile of the flattened ensemble states.

    Weights are (in, out) with out padded to 128 lanes; biases are f32 (1, out).
    Matmuls accumulate in f32; intermediates are cast back to the weight dtype
    (bf16 by default) so every dot feeds the MXU with its native operand dtype.
    """
    cdt = w1_ref.dtype  # compute dtype for MXU operands (bf16 or f32)

    h = x_ref[...]
    h = jnp.maximum(
        jnp.dot(h, w1_ref[...], preferred_element_type=jnp.float32) + b1_ref[...],
        0.0).astype(cdt)
    h = jnp.maximum(
        jnp.dot(h, w2_ref[...], preferred_element_type=jnp.float32) + b2_ref[...],
        0.0).astype(cdt)
    h = jnp.maximum(
        jnp.dot(h, w3_ref[...], preferred_element_type=jnp.float32) + b3_ref[...],
        0.0).astype(cdt)
    h = jnp.maximum(
        jnp.dot(h, w4_ref[...], preferred_element_type=jnp.float32) + b4_ref[...],
        0.0).astype(cdt)
    z = jnp.dot(h, w5_ref[...], preferred_element_type=jnp.float32) + b5_ref[...]
    o_ref[...] = z.astype(o_ref.dtype)


def init_params(key, dim_x, dim_z):
    """Logical (unpadded) parameters, same shapes/init scheme as the PyTorch module.

    PyTorch nn.Linear stores weight as (out, in); here we store the transpose
    (in, out) so the kernel computes x @ W + b. Init mimics the default
    U(-1/sqrt(fan_in), 1/sqrt(fan_in)) scheme.
    """
    dims = [dim_x, 64, 128, 128, 64, dim_z]
    params = []
    keys = jax.random.split(key, 2 * (len(dims) - 1))
    for i in range(len(dims) - 1):
        fan_in, fan_out = dims[i], dims[i + 1]
        bound = 1.0 / (fan_in ** 0.5)
        w = jax.random.uniform(keys[2 * i], (fan_in, fan_out),
                               minval=-bound, maxval=bound, dtype=jnp.float32)
        b = jax.random.uniform(keys[2 * i + 1], (1, fan_out),
                               minval=-bound, maxval=bound, dtype=jnp.float32)
        params.append((w, b))
    return params


def pad_params(params, compute_dtype=jnp.bfloat16):
    """Zero-pad every layer's output width (and the next layer's input width) to a
    multiple of 128 lanes. Zero columns/rows contribute nothing, so the padded MLP
    is exactly equivalent on the first dim_z output lanes."""
    padded = []
    prev_out_pad = None
    for i, (w, b) in enumerate(params):
        fin, fout = w.shape
        in_pad = fin if i == 0 else prev_out_pad
        out_pad = ((fout + LANE - 1) // LANE) * LANE
        wp = jnp.zeros((in_pad, out_pad), compute_dtype)
        wp = wp.at[:fin, :fout].set(w.astype(compute_dtype))
        bp = jnp.zeros((1, out_pad), jnp.float32)
        bp = bp.at[:, :fout].set(b)
        padded += [wp, bp]
        prev_out_pad = out_pad
    return tuple(padded)


@functools.partial(jax.jit, static_argnames=("dim_z", "block_rows"))
def observation_model(state, padded_params, *, dim_z, block_rows=512):
    """state: [bs, k, dim_x] -> z_pred: [bs, k, dim_z] (float32)."""
    bs, k, dim_x = state.shape
    rows = bs * k
    compute_dtype = padded_params[0].dtype
    out_pad = padded_params[-2].shape[1]          # last layer's padded width (>=128)

    # Flatten ensemble rows; cast to the MXU operand dtype (halves x DMA for bf16).
    x = state.reshape(rows, dim_x).astype(compute_dtype)

    # Row tiling: one full-extent block for small problems, 512-row tiles otherwise.
    # Ragged final tiles are handled by Pallas OOB read-padding / write-masking, so
    # no HBM-side jnp.pad of x is needed.
    if rows <= block_rows:
        tm = rows
    else:
        tm = block_rows                            # multiple of 8
    grid = (pl.cdiv(rows, tm),)

    in_specs = [pl.BlockSpec((tm, dim_x), lambda i: (i, 0))]
    for p in padded_params:
        # Constant index_map: each weight/bias is DMA'd once and stays VMEM-resident.
        # (Could additionally be single-buffered via pipeline_mode=pl.Buffered(1);
        #  kept at the default for portability — weights total only ~140 KiB.)
        in_specs.append(pl.BlockSpec(p.shape, lambda i: (0, 0)))

    # Advisory cost estimate for XLA's scheduler.
    layer_dims = [dim_x] + [padded_params[2 * i].shape[1] for i in range(5)]
    flops = 2 * rows * sum(a * b for a, b in zip(layer_dims[:-1], layer_dims[1:]))
    weight_bytes = sum(int(p.size) * p.dtype.itemsize for p in padded_params)
    bytes_accessed = (rows * dim_x * jnp.dtype(compute_dtype).itemsize
                      + rows * out_pad * 4
                      + weight_bytes)
    cost = pl.CostEstimate(flops=flops, transcendentals=0,
                           bytes_accessed=bytes_accessed)

    out = pl.pallas_call(
        _mlp_kernel,
        grid=grid,
        in_specs=in_specs,
        # Lane-dense (128-wide) output block -> unmasked vector stores.
        out_specs=pl.BlockSpec((tm, out_pad), lambda i: (i, 0)),
        out_shape=jax.ShapeDtypeStruct((rows, out_pad), jnp.float32),
        compiler_params=pltpu.CompilerParams(
            dimension_semantics=("parallel",)),
        cost_estimate=cost,
    )(x, *padded_params)

    return out[:, :dim_z].reshape(bs, k, dim_z)


def observation_model_ref(state, params):
    """Pure-JAX (f32) reference for correctness checking."""
    bs, k, dim_x = state.shape
    h = state.reshape(bs * k, dim_x)
    for i, (w, b) in enumerate(params):
        h = h @ w + b
        if i < len(params) - 1:
            h = jnp.maximum(h, 0.0)
    return h.reshape(bs, k, -1)


if __name__ == "__main__":
    # Small shapes consistent with the module: [batch, num_ensemble, dim_x]
    batch_size = 2
    num_ensemble = 8
    dim_x = 32
    dim_z = 8

    key = jax.random.PRNGKey(0)
    k_state, k_params = jax.random.split(key)

    state = jax.random.normal(k_state, (batch_size, num_ensemble, dim_x),
                              dtype=jnp.float32)
    params = init_params(k_params, dim_x, dim_z)
    z_ref = observation_model_ref(state, params)

    # bf16-operand / f32-accumulate path (preferred on v6e / v7x).
    params_bf16 = pad_params(params, compute_dtype=jnp.bfloat16)
    z_bf16 = observation_model(state, params_bf16, dim_z=dim_z)
    z_bf16 = jax.block_until_ready(z_bf16)
    assert z_bf16.shape == (batch_size, num_ensemble, dim_z)
    assert jnp.allclose(z_bf16, z_ref, atol=3e-2, rtol=3e-2)

    # f32-operand path (for strict numerical check / v5e fallback).
    params_f32 = pad_params(params, compute_dtype=jnp.float32)
    z_f32 = observation_model(state, params_f32, dim_z=dim_z)
    z_f32 = jax.block_until_ready(z_f32)
    assert jnp.allclose(z_f32, z_ref, atol=1e-5, rtol=1e-5)

    print("KERNEL_OK")
</pallas_src>

<mosaic_0001>
module attributes {stable_mosaic.version = 11 : i64} {
  func.func @_mlp_kernel(%arg0: i32, %arg1: memref<16x32xbf16, #tpu.memory_space<vmem>>, %arg2: memref<32x128xbf16, #tpu.memory_space<vmem>>, %arg3: memref<1x128xf32, #tpu.memory_space<vmem>>, %arg4: memref<128x128xbf16, #tpu.memory_space<vmem>>, %arg5: memref<1x128xf32, #tpu.memory_space<vmem>>, %arg6: memref<128x128xbf16, #tpu.memory_space<vmem>>, %arg7: memref<1x128xf32, #tpu.memory_space<vmem>>, %arg8: memref<128x128xbf16, #tpu.memory_space<vmem>>, %arg9: memref<1x128xf32, #tpu.memory_space<vmem>>, %arg10: memref<128x128xbf16, #tpu.memory_space<vmem>>, %arg11: memref<1x128xf32, #tpu.memory_space<vmem>>, %arg12: memref<16x128xf32, #tpu.memory_space<vmem>>) attributes {dimension_semantics = [#tpu.dimension_semantics<parallel>], iteration_bounds = array<i64: 1>, scalar_prefetch = 0 : i64, scratch_operands = 0 : i64, tpu.core_type = #tpu.core_type<tc>, window_params = [{transform_indices = @transform_0, window_bounds = array<i64: 16, 32>}, {pipeline_mode = #tpu.pipeline_mode<synchronous>, transform_indices = @transform_1, window_bounds = array<i64: 32, 128>}, {pipeline_mode = #tpu.pipeline_mode<synchronous>, transform_indices = @transform_2, window_bounds = array<i64: 1, 128>}, {pipeline_mode = #tpu.pipeline_mode<synchronous>, transform_indices = @transform_3, window_bounds = array<i64: 128, 128>}, {pipeline_mode = #tpu.pipeline_mode<synchronous>, transform_indices = @transform_4, window_bounds = array<i64: 1, 128>}, {pipeline_mode = #tpu.pipeline_mode<synchronous>, transform_indices = @transform_5, window_bounds = array<i64: 128, 128>}, {pipeline_mode = #tpu.pipeline_mode<synchronous>, transform_indices = @transform_6, window_bounds = array<i64: 1, 128>}, {pipeline_mode = #tpu.pipeline_mode<synchronous>, transform_indices = @transform_7, window_bounds = array<i64: 128, 128>}, {pipeline_mode = #tpu.pipeline_mode<synchronous>, transform_indices = @transform_8, window_bounds = array<i64: 1, 128>}, {pipeline_mode = #tpu.pipeline_mode<synchronous>, transform_indices = @transform_9, window_bounds = array<i64: 128, 128>}, {pipeline_mode = #tpu.pipeline_mode<synchronous>, transform_indices = @transform_10, window_bounds = array<i64: 1, 128>}, {transform_indices = @transform_11, window_bounds = array<i64: 16, 128>}]} {
    %c0 = arith.constant 0 : index
    %c0_0 = arith.constant 0 : index
    %0 = vector.load %arg1[%c0, %c0_0] : memref<16x32xbf16, #tpu.memory_space<vmem>>, vector<16x32xbf16>
    %c0_1 = arith.constant 0 : index
    %c0_2 = arith.constant 0 : index
    %1 = vector.load %arg2[%c0_1, %c0_2] : memref<32x128xbf16, #tpu.memory_space<vmem>>, vector<32x128xbf16>
    %cst = arith.constant dense<0.000000e+00> : vector<16x128xf32>
    %2 = tpu.matmul %0, %1, %cst {dimension_numbers = #tpu.dot_dimension_numbers<[1], [0], [0], [1], [0, 0, 1, 1], [], []>} : vector<16x32xbf16>, vector<32x128xbf16>, vector<16x128xf32> -> vector<16x128xf32>
    %c0_3 = arith.constant 0 : index
    %c0_4 = arith.constant 0 : index
    %3 = vector.load %arg3[%c0_3, %c0_4] : memref<1x128xf32, #tpu.memory_space<vmem>>, vector<1x128xf32>
    %4 = vector.broadcast %3 : vector<1x128xf32> to vector<16x128xf32>
    %5 = arith.addf %2, %4 : vector<16x128xf32>
    %cst_5 = arith.constant 0.000000e+00 : f32
    %6 = vector.broadcast %cst_5 : f32 to vector<16x128xf32>
    %7 = arith.maximumf %5, %6 : vector<16x128xf32>
    %8 = arith.truncf %7 : vector<16x128xf32> to vector<16x128xbf16>
    %c0_6 = arith.constant 0 : index
    %c0_7 = arith.constant 0 : index
    %9 = vector.load %arg4[%c0_6, %c0_7] : memref<128x128xbf16, #tpu.memory_space<vmem>>, vector<128x128xbf16>
    %cst_8 = arith.constant dense<0.000000e+00> : vector<16x128xf32>
    %10 = tpu.matmul %8, %9, %cst_8 {dimension_numbers = #tpu.dot_dimension_numbers<[1], [0], [0], [1], [0, 0, 1, 1], [], []>} : vector<16x128xbf16>, vector<128x128xbf16>, vector<16x128xf32> -> vector<16x128xf32>
    %c0_9 = arith.constant 0 : index
    %c0_10 = arith.constant 0 : index
    %11 = vector.load %arg5[%c0_9, %c0_10] : memref<1x128xf32, #tpu.memory_space<vmem>>, vector<1x128xf32>
    %12 = vector.broadcast %11 : vector<1x128xf32> to vector<16x128xf32>
    %13 = arith.addf %10, %12 : vector<16x128xf32>
    %cst_11 = arith.constant 0.000000e+00 : f32
    %14 = vector.broadcast %cst_11 : f32 to vector<16x128xf32>
    %15 = arith.maximumf %13, %14 : vector<16x128xf32>
    %16 = arith.truncf %15 : vector<16x128xf32> to vector<16x128xbf16>
    %c0_12 = arith.constant 0 : index
    %c0_13 = arith.constant 0 : index
    %17 = vector.load %arg6[%c0_12, %c0_13] : memref<128x128xbf16, #tpu.memory_space<vmem>>, vector<128x128xbf16>
    %cst_14 = arith.constant dense<0.000000e+00> : vector<16x128xf32>
    %18 = tpu.matmul %16, %17, %cst_14 {dimension_numbers = #tpu.dot_dimension_numbers<[1], [0], [0], [1], [0, 0, 1, 1], [], []>} : vector<16x128xbf16>, vector<128x128xbf16>, vector<16x128xf32> -> vector<16x128xf32>
    %c0_15 = arith.constant 0 : index
    %c0_16 = arith.constant 0 : index
    %19 = vector.load %arg7[%c0_15, %c0_16] : memref<1x128xf32, #tpu.memory_space<vmem>>, vector<1x128xf32>
    %20 = vector.broadcast %19 : vector<1x128xf32> to vector<16x128xf32>
    %21 = arith.addf %18, %20 : vector<16x128xf32>
    %cst_17 = arith.constant 0.000000e+00 : f32
    %22 = vector.broadcast %cst_17 : f32 to vector<16x128xf32>
    %23 = arith.maximumf %21, %22 : vector<16x128xf32>
    %24 = arith.truncf %23 : vector<16x128xf32> to vector<16x128xbf16>
    %c0_18 = arith.constant 0 : index
    %c0_19 = arith.constant 0 : index
    %25 = vector.load %arg8[%c0_18, %c0_19] : memref<128x128xbf16, #tpu.memory_space<vmem>>, vector<128x128xbf16>
    %cst_20 = arith.constant dense<0.000000e+00> : vector<16x128xf32>
    %26 = tpu.matmul %24, %25, %cst_20 {dimension_numbers = #tpu.dot_dimension_numbers<[1], [0], [0], [1], [0, 0, 1, 1], [], []>} : vector<16x128xbf16>, vector<128x128xbf16>, vector<16x128xf32> -> vector<16x128xf32>
    %c0_21 = arith.constant 0 : index
    %c0_22 = arith.constant 0 : index
    %27 = vector.load %arg9[%c0_21, %c0_22] : memref<1x128xf32, #tpu.memory_space<vmem>>, vector<1x128xf32>
    %28 = vector.broadcast %27 : vector<1x128xf32> to vector<16x128xf32>
    %29 = arith.addf %26, %28 : vector<16x128xf32>
    %cst_23 = arith.constant 0.000000e+00 : f32
    %30 = vector.broadcast %cst_23 : f32 to vector<16x128xf32>
    %31 = arith.maximumf %29, %30 : vector<16x128xf32>
    %32 = arith.truncf %31 : vector<16x128xf32> to vector<16x128xbf16>
    %c0_24 = arith.constant 0 : index
    %c0_25 = arith.constant 0 : index
    %33 = vector.load %arg10[%c0_24, %c0_25] : memref<128x128xbf16, #tpu.memory_space<vmem>>, vector<128x128xbf16>
    %cst_26 = arith.constant dense<0.000000e+00> : vector<16x128xf32>
    %34 = tpu.matmul %32, %33, %cst_26 {dimension_numbers = #tpu.dot_dimension_numbers<[1], [0], [0], [1], [0, 0, 1, 1], [], []>} : vector<16x128xbf16>, vector<128x128xbf16>, vector<16x128xf32> -> vector<16x128xf32>
    %c0_27 = arith.constant 0 : index
    %c0_28 = arith.constant 0 : index
    %35 = vector.load %arg11[%c0_27, %c0_28] : memref<1x128xf32, #tpu.memory_space<vmem>>, vector<1x128xf32>
    %36 = vector.broadcast %35 : vector<1x128xf32> to vector<16x128xf32>
    %37 = arith.addf %34, %36 : vector<16x128xf32>
    %c0_29 = arith.constant 0 : index
    %c0_30 = arith.constant 0 : index
    %38 = vector.load %arg12[%c0_29, %c0_30] : memref<16x128xf32, #tpu.memory_space<vmem>>, vector<16x128xf32>
    tpu.vector_store %arg12[%c0_29, %c0_30], %37 {strides = array<i32>} : memref<16x128xf32, #tpu.memory_space<vmem>>, vector<16x128xf32>,
    return
  }
  func.func @transform_0(%arg0: i32) -> (i32, i32) {
    %c0_i32 = arith.constant 0 : i32
    %c0_i32_0 = arith.constant 0 : i32
    return %arg0, %c0_i32 : i32, i32
  }
  func.func @transform_1(%arg0: i32) -> (i32, i32) {
    %c0_i32 = arith.constant 0 : i32
    %c0_i32_0 = arith.constant 0 : i32
    %c0_i32_1 = arith.constant 0 : i32
    return %c0_i32, %c0_i32_0 : i32, i32
  }
  func.func @transform_2(%arg0: i32) -> (i32, i32) {
    %c0_i32 = arith.constant 0 : i32
    %c0_i32_0 = arith.constant 0 : i32
    %c0_i32_1 = arith.constant 0 : i32
    return %c0_i32, %c0_i32_0 : i32, i32
  }
  func.func @transform_3(%arg0: i32) -> (i32, i32) {
    %c0_i32 = arith.constant 0 : i32
    %c0_i32_0 = arith.constant 0 : i32
    %c0_i32_1 = arith.constant 0 : i32
    return %c0_i32, %c0_i32_0 : i32, i32
  }
  func.func @transform_4(%arg0: i32) -> (i32, i32) {
    %c0_i32 = arith.constant 0 : i32
    %c0_i32_0 = arith.constant 0 : i32
    %c0_i32_1 = arith.constant 0 : i32
    return %c0_i32, %c0_i32_0 : i32, i32
  }
  func.func @transform_5(%arg0: i32) -> (i32, i32) {
    %c0_i32 = arith.constant 0 : i32
    %c0_i32_0 = arith.constant 0 : i32
    %c0_i32_1 = arith.constant 0 : i32
    return %c0_i32, %c0_i32_0 : i32, i32
  }
  func.func @transform_6(%arg0: i32) -> (i32, i32) {
    %c0_i32 = arith.constant 0 : i32
    %c0_i32_0 = arith.constant 0 : i32
    %c0_i32_1 = arith.constant 0 : i32
    return %c0_i32, %c0_i32_0 : i32, i32
  }
  func.func @transform_7(%arg0: i32) -> (i32, i32) {
    %c0_i32 = arith.constant 0 : i32
    %c0_i32_0 = arith.constant 0 : i32
    %c0_i32_1 = arith.constant 0 : i32
    return %c0_i32, %c0_i32_0 : i32, i32
  }
  func.func @transform_8(%arg0: i32) -> (i32, i32) {
    %c0_i32 = arith.constant 0 : i32
    %c0_i32_0 = arith.constant 0 : i32
    %c0_i32_1 = arith.constant 0 : i32
    return %c0_i32, %c0_i32_0 : i32, i32
  }
  func.func @transform_9(%arg0: i32) -> (i32, i32) {
    %c0_i32 = arith.constant 0 : i32
    %c0_i32_0 = arith.constant 0 : i32
    %c0_i32_1 = arith.constant 0 : i32
    return %c0_i32, %c0_i32_0 : i32, i32
  }
  func.func @transform_10(%arg0: i32) -> (i32, i32) {
    %c0_i32 = arith.constant 0 : i32
    %c0_i32_0 = arith.constant 0 : i32
    %c0_i32_1 = arith.constant 0 : i32
    return %c0_i32, %c0_i32_0 : i32, i32
  }
  func.func @transform_11(%arg0: i32) -> (i32, i32) {
    %c0_i32 = arith.constant 0 : i32
    %c0_i32_0 = arith.constant 0 : i32
    return %arg0, %c0_i32 : i32, i32
  }
}

</mosaic_0001>

<bundles_post_ra>
// kernel: observation_model.1
= control target key start
LH: loop header
LB: loop body
LE: loop exit
PB: predicated region body
PF: predicated region fallthrough
CT: control target
= control target key end

     0   :  { %16 = vsyncpa [#allocation3], 0  ;;  %s1159_s0 = inlined_call_operand.vmem [shape: bf16[16,32], index: 0, kind: input, shape index: {}]   ;;  %s1160_s1 = inlined_call_operand.vmem [shape: bf16[32,128], index: 1, kind: input, shape index: {}]   ;;  %s1161_s2 = inlined_call_operand.vmem [shape: f32[1,128], index: 2, kind: input, shape index: {}]   ;;  %s1162_s3 = inlined_call_operand.hbm [shape: bf16[128,128], index: 3, kind: input, shape index: {}]   ;;  %s1163_s4 = inlined_call_operand.vmem [shape: f32[1,128], index: 4, kind: input, shape index: {}]   ;;  %s1164_s5 = inlined_call_operand.hbm [shape: bf16[128,128], index: 5, kind: input, shape index: {}]   ;;  %s1165_s6 = inlined_call_operand.vmem [shape: f32[1,128], index: 6, kind: input, shape index: {}]   ;;  %s1166_s7 = inlined_call_operand.hbm [shape: bf16[128,128], index: 7, kind: input, shape index: {}]   ;;  %s1167_s8 = inlined_call_operand.vmem [shape: f32[1,128], index: 8, kind: input, shape index: {}]   ;;  %s1168_s9 = inlined_call_operand.hbm [shape: bf16[128,128], index: 9, kind: input, shape index: {}]   ;;  %s1169_s10 = inlined_call_operand.vmem [shape: f32[1,128], index: 10, kind: input, shape index: {}]   ;;  %s1170_s11 = inlined_call_operand.vmem [shape: f32[16,128], index: 11, kind: output, shape index: {}]  }
   0x1   :  { %17 = vsyncpa [#allocation5], 0 }
   0x2   :  { %18 = vsyncpa [#allocation8], 0  ;;  %s943_s17 = smov [#allocation4]   ;;  %s944_s19 = smov [#allocation2]  }
   0x3   :  { %s44_s18 = sshll.u32 %s943_s17, 4  ;;  %s30_s20 = sshll.u32 %s944_s19, 4  ;;  %s45_s18 = int_to_ptr.vmem [resolvable:$true] %s44_s18  ;;  %s1011_s20 = int_to_ptr.vmem [resolvable:$true] %s30_s20 }
   0x4   :  { %s849_s23 = scalar_lea.hbm %s1164_s5, 1024 }
   0x5   :  { %p850_p0 = scmp.ne.s32.totalorder %s1164_s5, %s849_s23  ;;  %p853_p1 = scmp.lt.u32.totalorder %s849_s23, %s1164_s5 }
   0x7   :  { %p855_p2 = pnand %p853_p1, %p850_p0 }
   0x9   :  { %858 = shalt.err (!%p855_p2)
}
   0xa   :  { %s859_s28 = scalar_lea.vmem %s45_s18, 1024  ;;  %p864_p4 = scmp.lt.s32.totalorder %s45_s18, %s45_s18 }
   0xb   :  { %p860_p3 = scmp.ne.s32.totalorder %s45_s18, %s859_s28  ;;  %p865_p5 = scmp.lt.s32.totalorder %s859_s28, %s859_s28 }
   0xd   :  { %p866_p6 = por %p865_p5, %p864_p4 }
   0xf   :  { %p867_p7 = pnand %p866_p6, %p860_p3 }
  0x11   :  { %870 = shalt.err (!%p867_p7)
}
  0x12   :  { %s945_s29 = smov 64   ;;  %s946_s30 = smov 4  }
  0x13   :  { %50 = dma.hbm_to_vmem [thread:$0]  %s1164_s5, 1024, %s45_s18, [#allocation5], %s945_s29, %s945_s29, %s946_s30  }
  0x14   :  { %s871_s16 = scalar_lea.hbm %s1162_s3, 1024 }
  0x15   :  { %p872_p8 = scmp.ne.s32.totalorder %s1162_s3, %s871_s16  ;;  %p875_p9 = scmp.lt.u32.totalorder %s871_s16, %s1162_s3 }
  0x17   :  { %p877_p10 = pnand %p875_p9, %p872_p8 }
  0x19   :  { %880 = shalt.err (!%p877_p10)
}
  0x1a   :  { %s881_s23 = scalar_lea.vmem %s1011_s20, 1024  ;;  %p886_p12 = scmp.lt.s32.totalorder %s1011_s20, %s1011_s20 }
  0x1b   :  { %p882_p11 = scmp.ne.s32.totalorder %s1011_s20, %s881_s23  ;;  %p887_p13 = scmp.lt.s32.totalorder %s881_s23, %s881_s23 }
  0x1d   :  { %p888_p0 = por %p887_p13, %p886_p12 }
  0x1f   :  { %p889_p1 = pnand %p888_p0, %p882_p11 }
  0x21   :  { %892 = shalt.err (!%p889_p1)
}
  0x22   :  { %36 = dma.hbm_to_vmem [thread:$0]  %s1162_s3, 1024, %s1011_s20, [#allocation3], %s945_s29, %s945_s29, %s946_s30  }
  0x23   :  { %s947_s24 = smov [#allocation6]   ;;  %s948_s26 = smov [#allocation7]  }
  0x24   :  { %s58_s25 = sshll.u32 %s947_s24, 4  ;;  %s72_s27 = sshll.u32 %s948_s26, 4  ;;  %s59_s25 = int_to_ptr.vmem [resolvable:$true] %s58_s25  ;;  %s1048_s27 = int_to_ptr.vmem [resolvable:$true] %s72_s27 }
  0x25   :  { %s893_s13 = scalar_lea.hbm %s1166_s7, 1024 }
  0x26   :  { %p894_p2 = scmp.ne.s32.totalorder %s1166_s7, %s893_s13  ;;  %p897_p3 = scmp.lt.u32.totalorder %s893_s13, %s1166_s7 }
  0x28   :  { %p899_p4 = pnand %p897_p3, %p894_p2 }
  0x2a   :  { %902 = shalt.err (!%p899_p4)
}
  0x2b   :  { %s903_s3 = scalar_lea.vmem %s59_s25, 1024  ;;  %p908_p6 = scmp.lt.s32.totalorder %s59_s25, %s59_s25 }
  0x2c   :  { %p904_p5 = scmp.ne.s32.totalorder %s59_s25, %s903_s3  ;;  %p909_p7 = scmp.lt.s32.totalorder %s903_s3, %s903_s3 }
  0x2e   :  { %p910_p8 = por %p909_p7, %p908_p6 }
  0x30   :  { %p911_p9 = pnand %p910_p8, %p904_p5 }
  0x32   :  { %914 = shalt.err (!%p911_p9)
}
  0x33   :  { %64 = dma.hbm_to_vmem [thread:$0]  %s1166_s7, 1024, %s59_s25, [#allocation5], %s945_s29, %s945_s29, %s946_s30  }
  0x34   :  { %s915_s23 = scalar_lea.hbm %s1168_s9, 1024 }
  0x35   :  { %p916_p10 = scmp.ne.s32.totalorder %s1168_s9, %s915_s23  ;;  %p919_p11 = scmp.lt.u32.totalorder %s915_s23, %s1168_s9 }
  0x37   :  { %p921_p12 = pnand %p919_p11, %p916_p10 }
  0x39   :  { %924 = shalt.err (!%p921_p12)
}
  0x3a   :  { %s925_s28 = scalar_lea.vmem %s1048_s27, 1024  ;;  %p930_p0 = scmp.lt.s32.totalorder %s1048_s27, %s1048_s27 }
  0x3b   :  { %p926_p13 = scmp.ne.s32.totalorder %s1048_s27, %s925_s28  ;;  %p931_p1 = scmp.lt.s32.totalorder %s925_s28, %s925_s28 }
  0x3d   :  { %p932_p2 = por %p931_p1, %p930_p0 }
  0x3f   :  { %p933_p3 = pnand %p932_p2, %p926_p13 }
  0x41   :  { %936 = shalt.err (!%p933_p3)
}
  0x42   :  { %78 = dma.hbm_to_vmem [thread:$0]  %s1168_s9, 1024, %s1048_s27, [#allocation8], %s945_s29, %s945_s29, %s946_s30  }
  0x43   :  { %937 = dma.done.wait [#allocation3], 1024  }
  0x44   :  { %938 = vsyncadd [#allocation3], 4294966272 }
  0x45   :  { %939 = dma.done.wait [#allocation5], 2048  }
  0x46   :  { %940 = vsyncadd [#allocation5], 4294965248 }
  0x47   :  { %941 = dma.done.wait [#allocation8], 1024  }
  0x48   :  { %942 = vsyncadd [#allocation8], 4294966272  ;;  %v949_v0 = vmov 0.0   ;;  %vm950_vm0 = vmmov 0   ;;  %v814_v1 = vld [vmem:[%s1160_s1] sm:$0xff]   ;;  %v815_v2 = vld [vmem:[%s1160_s1 + $0x8] sm:$0xff]  }
  0x49   :  { %718 = vmatprep.subr.bf16.mxu0 %v949_v0  ;;  %722 = vmatprep.mubr.msk.bf16.mxu0 %vm950_vm0, %v949_v0  ;;  %v817_v3 = vld [vmem:[#allocation2] sm:$0xff]   ;;  %v818_v5 = vld [vmem:[#allocation2 + $0x8] sm:$0xff]   ;;  %vm124_vm1 = vcmask 261120   ;;  %v819_v6 = vld [vmem:[#allocation2 + $0x10] sm:$0xff]  }
  0x4a   :  { %726 = vmatprep.subr.bf16.mxu1 %v949_v0  ;;  %742 = vmatprep.mubr.msk.bf16.mxu1 %vm950_vm0, %v949_v0  ;;  %v816_v4 = vld [vmem:[%s1159_s0] sm:$0xff]   ;;  %v820_v7 = vld [vmem:[#allocation2 + $0x18] sm:$0xff]   ;;  %v822_v9 = vld [vmem:[#allocation2 + $0x28] sm:$0xff]  }
  0x4b   :  { %719 = vmatpush3.bf16.msra.mxu0 %v814_v1  ;;  %727 = vmatpush3.bf16.msra.mxu1 %v817_v3  ;;  %v821_v8 = vld [vmem:[#allocation2 + $0x20] sm:$0xff]   ;;  %v823_v10 = vld [vmem:[#allocation2 + $0x30] sm:$0xff]   ;;  %v824_v11 = vld [vmem:[#allocation2 + $0x38] sm:$0xff]  }
  0x4c   :  { %720 = vmatprep.subr.bf16.mxu0 %v949_v0  ;;  %728 = vmatprep.subr.bf16.mxu1 %v949_v0  ;;  %v825_v12 = vld [vmem:[#allocation4] sm:$0xff]   ;;  %v826_v13 = vld [vmem:[#allocation4 + $0x8] sm:$0xff]   ;;  %v827_v14 = vld [vmem:[#allocation4 + $0x10] sm:$0xff]  }
  0x4d   :  { %v828_v15 = vld [vmem:[#allocation4 + $0x18] sm:$0xff]   ;;  %v829_v16 = vld [vmem:[#allocation4 + $0x20] sm:$0xff]   ;;  %v830_v17 = vld [vmem:[#allocation4 + $0x28] sm:$0xff]  }
  0x4e   :  { %v638_v18 = vld [vmem:[%s1161_s2] ss:$0 sm:$0xff]  ;;  %v831_v28 = vld [vmem:[#allocation4 + $0x30] sm:$0xff]   ;;  %v832_v29 = vld [vmem:[#allocation4 + $0x38] sm:$0xff]  }
  0x4f   :  { %721 = vmatpush3.bf16.msra.mxu0 %v815_v2  ;;  %729 = vmatpush3.bf16.msra.mxu1 %v818_v5  ;;  %v833_v30 = vld [vmem:[#allocation6] sm:$0xff]   ;;  %v834_v31 = vld [vmem:[#allocation6 + $0x8] sm:$0xff]   ;;  %v835_v32 = vld [vmem:[#allocation6 + $0x10] sm:$0xff]  }
  0x50   :  { %746 = vmatprep.subr.bf16.mxu0 %v949_v0  ;;  %730 = vmatprep.subr.bf16.mxu1 %v949_v0  ;;  %v836_v33 = vld [vmem:[#allocation6 + $0x18] sm:$0xff]   ;;  %v837_v34 = vld [vmem:[#allocation6 + $0x20] sm:$0xff]   ;;  %v838_v35 = vld [vmem:[#allocation6 + $0x28] sm:$0xff]  }
  0x51   :  { %v643_v36 = vld [vmem:[%s1163_s4] ss:$0 sm:$0xff]  ;;  %v839_v46 = vld [vmem:[#allocation6 + $0x30] sm:$0xff]   ;;  %v840_v47 = vld [vmem:[#allocation6 + $0x38] sm:$0xff]  }
  0x52   :  { %723 = vmatmul.mubr.msk.bf16.vlgmr.msra.gmra.mrb[0].mxu0 %vm124_vm1, %v816_v4  ;;  %v841_v48 = vld [vmem:[#allocation7] sm:$0xff]   ;;  %v842_v49 = vld [vmem:[#allocation7 + $0x8] sm:$0xff]   ;;  %v843_v50 = vld [vmem:[#allocation7 + $0x10] sm:$0xff]  }
  0x53   :  { %762 = vmatprep.mubr.msk.bf16.mxu0 %vm950_vm0, %v949_v0  ;;  %731 = vmatpush3.bf16.msra.mxu1 %v819_v6  ;;  %v844_v51 = vld [vmem:[#allocation7 + $0x18] sm:$0xff]   ;;  %v845_v52 = vld [vmem:[#allocation7 + $0x20] sm:$0xff]   ;;  %v846_v53 = vld [vmem:[#allocation7 + $0x28] sm:$0xff]  }
  0x54   :  { %732 = vmatprep.subr.bf16.mxu1 %v949_v0  ;;  %747 = vmatpush3.bf16.msra.mxu0 %v825_v12  ;;  %v652_v54 = vld [vmem:[%s1165_s6] ss:$0 sm:$0xff]  ;;  %v847_v1 = vld [vmem:[#allocation7 + $0x30] sm:$0xff]   ;;  %v848_v2 = vld [vmem:[#allocation7 + $0x38] sm:$0xff]  }
  0x55   :  { %748 = vmatprep.subr.bf16.mxu0 %v949_v0  ;;  %v661_v3 = vld [vmem:[%s1167_s8] ss:$0 sm:$0xff] }
  0x57   :  { %733 = vmatpush3.bf16.msra.mxu1 %v820_v7 }
  0x58   :  { %734 = vmatprep.subr.bf16.mxu1 %v949_v0  ;;  %749 = vmatpush3.bf16.msra.mxu0 %v826_v13 }
  0x59   :  { %750 = vmatprep.subr.bf16.mxu0 %v949_v0 }
  0x5b   :  { %735 = vmatpush3.bf16.msra.mxu1 %v821_v8 }
  0x5c   :  { %736 = vmatprep.subr.bf16.mxu1 %v949_v0  ;;  %751 = vmatpush3.bf16.msra.mxu0 %v827_v14 }
  0x5d   :  { %752 = vmatprep.subr.bf16.mxu0 %v949_v0 }
  0x5f   :  { %737 = vmatpush3.bf16.msra.mxu1 %v822_v9 }
  0x60   :  { %738 = vmatprep.subr.bf16.mxu1 %v949_v0  ;;  %753 = vmatpush3.bf16.msra.mxu0 %v828_v15 }
  0x61   :  { %754 = vmatprep.subr.bf16.mxu0 %v949_v0 }
  0x63   :  { %739 = vmatpush3.bf16.msra.mxu1 %v823_v10 }
  0x64   :  { %740 = vmatprep.subr.bf16.mxu1 %v949_v0  ;;  %755 = vmatpush3.bf16.msra.mxu0 %v829_v16 }
  0x65   :  { %756 = vmatprep.subr.bf16.mxu0 %v949_v0 }
  0x67   :  { %741 = vmatpush3.bf16.msra.mxu1 %v824_v11 }
  0x68   :  { %766 = vmatprep.subr.bf16.mxu1 %v949_v0  ;;  %757 = vmatpush3.bf16.msra.mxu0 %v830_v17 }
  0x69   :  { %758 = vmatprep.subr.bf16.mxu0 %v949_v0 }
  0x6c   :  { %759 = vmatpush3.bf16.msra.mxu0 %v831_v28 }
  0x6d   :  { %760 = vmatprep.subr.bf16.mxu0 %v949_v0 }
  0x70   :  { %761 = vmatpush3.bf16.msra.mxu0 %v832_v29 }
  0x71   :  { %786 = vmatprep.subr.bf16.mxu0 %v949_v0 }
 0x125   :  { %v162_v19 = vpop.f32.mrb[0].mxu0 }
 0x126   :  { %v163_v20 = vadd.f32 %v638_v18, %v162_v19  ;;  %v724_v21 = vpop.f32.mrb[1].mxu0 }
 0x127   :  { %v165_v22 = vpop.f32.mrb[2].mxu0 }
 0x128   :  { %v166_v23 = vadd.f32 %v638_v18, %v165_v22  ;;  %v725_v24 = vpop.f32.mrb[3].mxu0  ;;  %v169_v25 = vmax.f32 %v163_v20, 0.0 }
 0x12a   :  { %v170_v26 = vmax.f32 %v166_v23, 0.0 }
 0x12c   :  { %v171_v27 = vpack.c.bf16 %v170_v26, %v169_v25 }
 0x12e   :  { %743 = vmatmul.mubr.bf16.vlgmr.msra.gmra.mrb[0].mxu1 %v171_v27 }
 0x12f   :  { %782 = vmatprep.mubr.msk.bf16.mxu1 %vm950_vm0, %v949_v0  ;;  %767 = vmatpush3.bf16.msra.mxu1 %v833_v30 }
 0x130   :  { %768 = vmatprep.subr.bf16.mxu1 %v949_v0 }
 0x133   :  { %769 = vmatpush3.bf16.msra.mxu1 %v834_v31 }
 0x134   :  { %770 = vmatprep.subr.bf16.mxu1 %v949_v0 }
 0x137   :  { %771 = vmatpush3.bf16.msra.mxu1 %v835_v32 }
 0x138   :  { %772 = vmatprep.subr.bf16.mxu1 %v949_v0 }
 0x13b   :  { %773 = vmatpush3.bf16.msra.mxu1 %v836_v33 }
 0x13c   :  { %774 = vmatprep.subr.bf16.mxu1 %v949_v0 }
 0x13f   :  { %775 = vmatpush3.bf16.msra.mxu1 %v837_v34 }
 0x140   :  { %776 = vmatprep.subr.bf16.mxu1 %v949_v0 }
 0x143   :  { %777 = vmatpush3.bf16.msra.mxu1 %v838_v35 }
 0x144   :  { %778 = vmatprep.subr.bf16.mxu1 %v949_v0 }
 0x147   :  { %779 = vmatpush3.bf16.msra.mxu1 %v839_v46 }
 0x148   :  { %780 = vmatprep.subr.bf16.mxu1 %v949_v0 }
 0x14b   :  { %781 = vmatpush3.bf16.msra.mxu1 %v840_v47 }
 0x201   :  { %v277_v37 = vpop.f32.mrb[0].mxu1 }
 0x202   :  { %v278_v38 = vadd.f32 %v643_v36, %v277_v37  ;;  %v744_v39 = vpop.f32.mrb[1].mxu1 }
 0x203   :  { %v280_v40 = vpop.f32.mrb[2].mxu1 }
 0x204   :  { %v281_v41 = vadd.f32 %v643_v36, %v280_v40  ;;  %v745_v42 = vpop.f32.mrb[3].mxu1  ;;  %v284_v43 = vmax.f32 %v278_v38, 0.0 }
 0x206   :  { %v285_v44 = vmax.f32 %v281_v41, 0.0 }
 0x208   :  { %v286_v45 = vpack.c.bf16 %v285_v44, %v284_v43 }
 0x20a   :  { %763 = vmatmul.mubr.bf16.vlgmr.msra.gmra.mrb[4].mxu0 %v286_v45 }
 0x20b   :  { %802 = vmatprep.mubr.msk.bf16.mxu0 %vm950_vm0, %v949_v0  ;;  %787 = vmatpush3.bf16.msra.mxu0 %v841_v48 }
 0x20c   :  { %788 = vmatprep.subr.bf16.mxu0 %v949_v0 }
 0x20f   :  { %789 = vmatpush3.bf16.msra.mxu0 %v842_v49 }
 0x210   :  { %790 = vmatprep.subr.bf16.mxu0 %v949_v0 }
 0x213   :  { %791 = vmatpush3.bf16.msra.mxu0 %v843_v50 }
 0x214   :  { %792 = vmatprep.subr.bf16.mxu0 %v949_v0 }
 0x217   :  { %793 = vmatpush3.bf16.msra.mxu0 %v844_v51 }
 0x218   :  { %794 = vmatprep.subr.bf16.mxu0 %v949_v0 }
 0x21b   :  { %795 = vmatpush3.bf16.msra.mxu0 %v845_v52 }
 0x21c   :  { %796 = vmatprep.subr.bf16.mxu0 %v949_v0 }
 0x21f   :  { %797 = vmatpush3.bf16.msra.mxu0 %v846_v53 }
 0x220   :  { %798 = vmatprep.subr.bf16.mxu0 %v949_v0 }
 0x223   :  { %799 = vmatpush3.bf16.msra.mxu0 %v847_v1 }
 0x224   :  { %800 = vmatprep.subr.bf16.mxu0 %v949_v0  ;;  %v670_v0 = vld [vmem:[%s1169_s10] ss:$0 sm:$0xff] }
 0x227   :  { %801 = vmatpush3.bf16.msra.mxu0 %v848_v2 }
 0x2dd   :  { %v392_v55 = vpop.f32.mrb[4].mxu0 }
 0x2de   :  { %v393_v56 = vadd.f32 %v652_v54, %v392_v55  ;;  %v764_v57 = vpop.f32.mrb[5].mxu0 }
 0x2df   :  { %v395_v58 = vpop.f32.mrb[6].mxu0 }
 0x2e0   :  { %v396_v59 = vadd.f32 %v652_v54, %v395_v58  ;;  %v765_v60 = vpop.f32.mrb[7].mxu0  ;;  %v399_v61 = vmax.f32 %v393_v56, 0.0 }
 0x2e2   :  { %v400_v62 = vmax.f32 %v396_v59, 0.0 }
 0x2e4   :  { %v401_v63 = vpack.c.bf16 %v400_v62, %v399_v61 }
 0x2e6   :  { %783 = vmatmul.mubr.bf16.vlgmr.msra.gmra.mrb[4].mxu1 %v401_v63 }
 0x3b9   :  { %v507_v4 = vpop.f32.mrb[4].mxu1 }
 0x3ba   :  { %v508_v5 = vadd.f32 %v661_v3, %v507_v4  ;;  %v784_v6 = vpop.f32.mrb[5].mxu1 }
 0x3bb   :  { %v510_v7 = vpop.f32.mrb[6].mxu1 }
 0x3bc   :  { %v511_v8 = vadd.f32 %v661_v3, %v510_v7  ;;  %v785_v9 = vpop.f32.mrb[7].mxu1  ;;  %v514_v10 = vmax.f32 %v508_v5, 0.0 }
 0x3be   :  { %v515_v11 = vmax.f32 %v511_v8, 0.0 }
 0x3c0   :  { %v516_v12 = vpack.c.bf16 %v515_v11, %v514_v10 }
 0x3c2   :  { %803 = vmatmul.mubr.bf16.vlgmr.msra.gmra.mrb[8].mxu0 %v516_v12 }
 0x495   :  { %v622_v13 = vpop.f32.mrb[8].mxu0 }
 0x496   :  { %v623_v14 = vadd.f32 %v670_v0, %v622_v13  ;;  %v804_v15 = vpop.f32.mrb[9].mxu0 }
 0x497   :  { %v625_v16 = vpop.f32.mrb[10].mxu0 }
 0x498   :  { %629 = vst [vmem:[%s1170_s11] sm:$0xff] %v623_v14  ;;  %v626_v17 = vadd.f32 %v670_v0, %v625_v16  ;;  %v805_v18 = vpop.f32.mrb[11].mxu0 }
 0x49a   :  { %630 = vst [vmem:[%s1170_s11 + $0x8] sm:$0xff] %v626_v17 }
 0x49b   :  { %635 = vsyncpa [#allocation3], 1 }
 0x49c   :  { %636 = vsyncpa [#allocation5], 1 }
 0x49d   :  { %637 = vsyncpa [#allocation8], 1 }

</bundles_post_ra>
